<compile_context>
chip_gen: v7x
topology: tpu7x:2x2x1
jax: 0.10.0
libtpu: 0.0.40
codegen_flags: <defaults>
</compile_context>

<pallas_src>
import jax
import jax.numpy as jnp
from jax.experimental import pallas as pl
from jax.experimental.pallas import tpu as pltpu

_LANE = 128
_SUBLANE = 8


def _round_up(n: int, m: int) -> int:
    return ((n + m - 1) // m) * m


def _fcdqn_kernel(x_ref, w1_ref, b1_ref, w2_ref, b2_ref, w3_ref, b3_ref, o_ref):
    """Fused 3-layer MLP on one batch tile: (Linear+ReLU) x2 then Linear."""
    x = x_ref[...]

    h1 = jnp.dot(x, w1_ref[...], preferred_element_type=jnp.float32) + b1_ref[...]
    h1 = jnp.maximum(h1, 0.0)

    h2 = jnp.dot(h1, w2_ref[...], preferred_element_type=jnp.float32) + b2_ref[...]
    h2 = jnp.maximum(h2, 0.0)

    q = jnp.dot(h2, w3_ref[...], preferred_element_type=jnp.float32) + b3_ref[...]
    o_ref[...] = q.astype(o_ref.dtype)


def prepare_fcdqn_operands(params):
    """One-time prep: weights -> (in, out), biases -> (1, out), pad final layer
    to a 128-lane-dense output. Call once; reuse across forward calls."""
    assert len(params) == 3, "this kernel is specialized for layer_sizes=[h1, h2]"
    (w1, b1), (w2, b2), (w3, b3) = params
    num_actions = w3.shape[0]
    out_pad = _round_up(num_actions, _LANE)

    w1_t = jnp.asarray(w1).T                                   # (ni, h1)
    w2_t = jnp.asarray(w2).T                                   # (h1, h2)
    w3_t = jnp.pad(jnp.asarray(w3).T,                          # (h2, out_pad)
                   ((0, 0), (0, out_pad - num_actions)))
    b1_r = jnp.asarray(b1)[None, :]                            # (1, h1)
    b2_r = jnp.asarray(b2)[None, :]                            # (1, h2)
    b3_r = jnp.pad(jnp.asarray(b3), (0, out_pad - num_actions))[None, :]  # (1, out_pad)
    return (w1_t, b1_r, w2_t, b2_r, w3_t, b3_r), num_actions


def fcdqn_forward(x, prepped_operands, num_actions, *, max_batch_tile=512):
    """Fused FCDQN forward with a single pallas_call.

    x: (B, num_inputs) float32
    prepped_operands: output of prepare_fcdqn_operands(params)
    """
    w1_t, b1_r, w2_t, b2_r, w3_t, b3_r = prepped_operands
    B, ni = x.shape
    out_pad = w3_t.shape[1]

    # Batch tile: multiple of the 8-row sublane quantum, capped for VMEM/vreg
    # pressure (well under v7x's 64 MiB VMEM; h1/h2 temporaries stay modest).
    tb = min(max_batch_tile, _round_up(B, _SUBLANE))
    b_pad = _round_up(B, tb)
    if b_pad != B:
        x = jnp.pad(x, ((0, b_pad - B), (0, 0)))
    grid = (b_pad // tb,)

    weights = (w1_t, b1_r, w2_t, b2_r, w3_t, b3_r)

    def resident_spec(a):
        # Constant block index -> weight/bias DMA'd once, resident across grid.
        nd = a.ndim
        return pl.BlockSpec(a.shape, lambda i, _nd=nd: (0,) * _nd)

    h1 = w1_t.shape[1]
    h2 = w2_t.shape[1]
    flops = 2 * b_pad * (ni * h1 + h1 * h2 + h2 * out_pad)
    bytes_accessed = (
        x.size * x.dtype.itemsize
        + sum(int(w.size) * w.dtype.itemsize for w in weights)
        + b_pad * out_pad * 4
    )

    out = pl.pallas_call(
        _fcdqn_kernel,
        grid=grid,
        in_specs=[pl.BlockSpec((tb, ni), lambda i: (i, 0))]
        + [resident_spec(w) for w in weights],
        out_specs=pl.BlockSpec((tb, out_pad), lambda i: (i, 0)),
        out_shape=jax.ShapeDtypeStruct((b_pad, out_pad), jnp.float32),
        compiler_params=pltpu.CompilerParams(
            dimension_semantics=("parallel",),  # megacore batch sharding on v7x
        ),
        cost_estimate=pl.CostEstimate(
            flops=flops, transcendentals=0, bytes_accessed=bytes_accessed
        ),
    )(x, *weights)

    return out[:B, :num_actions]


def init_fcdqn_params(key, num_inputs, num_actions, layer_sizes=None):
    """Deterministic init mimicking torch.nn.Linear defaults (U(-1/sqrt(fan_in), +))."""
    if layer_sizes is None:
        layer_sizes = [24, 24]
    dims = [num_inputs] + list(layer_sizes) + [num_actions]
    params = []
    for i in range(len(dims) - 1):
        fan_in, fan_out = dims[i], dims[i + 1]
        key, kw, kb = jax.random.split(key, 3)
        bound = 1.0 / jnp.sqrt(jnp.float32(fan_in))
        w = jax.random.uniform(kw, (fan_out, fan_in), jnp.float32, -bound, bound)
        b = jax.random.uniform(kb, (fan_out,), jnp.float32, -bound, bound)
        params.append((w, b))
    return params


def fcdqn_reference(x, params):
    """Pure-JAX reference of the PyTorch forward pass."""
    h = x
    for i, (w, b) in enumerate(params):
        h = h @ w.T + b
        if i < len(params) - 1:
            h = jnp.maximum(h, 0.0)
    return h


if __name__ == "__main__":
    # Small shapes consistent with a vector-observation DQN.
    batch = 2
    num_inputs = 8
    num_actions = 4
    layer_sizes = [24, 24]  # module default

    key = jax.random.PRNGKey(0)
    key, kx = jax.random.split(key)
    x = jax.random.normal(kx, (batch, num_inputs), jnp.float32)

    params = init_fcdqn_params(key, num_inputs, num_actions, layer_sizes)

    # One-time weight prep (transpose + lane-dense padding of the final layer).
    prepped, na = prepare_fcdqn_operands(params)

    out = fcdqn_forward(x, prepped, na)
    out = jax.block_until_ready(out)

    ref = fcdqn_reference(x, params)
    assert out.shape == (batch, num_actions), out.shape
    assert jnp.allclose(out, ref, atol=1e-5, rtol=1e-5), (out, ref)

    print("KERNEL_OK")
</pallas_src>

<mosaic_0001>
module attributes {stable_mosaic.version = 11 : i64} {
  func.func @_fcdqn_kernel(%arg0: i32, %arg1: memref<8x8xf32, #tpu.memory_space<vmem>>, %arg2: memref<8x24xf32, #tpu.memory_space<vmem>>, %arg3: memref<1x24xf32, #tpu.memory_space<vmem>>, %arg4: memref<24x24xf32, #tpu.memory_space<vmem>>, %arg5: memref<1x24xf32, #tpu.memory_space<vmem>>, %arg6: memref<24x128xf32, #tpu.memory_space<vmem>>, %arg7: memref<1x128xf32, #tpu.memory_space<vmem>>, %arg8: memref<8x128xf32, #tpu.memory_space<vmem>>) attributes {dimension_semantics = [#tpu.dimension_semantics<parallel>], iteration_bounds = array<i64: 1>, scalar_prefetch = 0 : i64, scratch_operands = 0 : i64, tpu.core_type = #tpu.core_type<tc>, window_params = [{transform_indices = @transform_0, window_bounds = array<i64: 8, 8>}, {pipeline_mode = #tpu.pipeline_mode<synchronous>, transform_indices = @transform_1, window_bounds = array<i64: 8, 24>}, {pipeline_mode = #tpu.pipeline_mode<synchronous>, transform_indices = @transform_2, window_bounds = array<i64: 1, 24>}, {pipeline_mode = #tpu.pipeline_mode<synchronous>, transform_indices = @transform_3, window_bounds = array<i64: 24, 24>}, {pipeline_mode = #tpu.pipeline_mode<synchronous>, transform_indices = @transform_4, window_bounds = array<i64: 1, 24>}, {pipeline_mode = #tpu.pipeline_mode<synchronous>, transform_indices = @transform_5, window_bounds = array<i64: 24, 128>}, {pipeline_mode = #tpu.pipeline_mode<synchronous>, transform_indices = @transform_6, window_bounds = array<i64: 1, 128>}, {transform_indices = @transform_7, window_bounds = array<i64: 8, 128>}]} {
    %c0 = arith.constant 0 : index
    %c0_0 = arith.constant 0 : index
    %0 = vector.load %arg1[%c0, %c0_0] : memref<8x8xf32, #tpu.memory_space<vmem>>, vector<8x8xf32>
    %c0_1 = arith.constant 0 : index
    %c0_2 = arith.constant 0 : index
    %1 = vector.load %arg2[%c0_1, %c0_2] : memref<8x24xf32, #tpu.memory_space<vmem>>, vector<8x24xf32>
    %cst = arith.constant dense<0.000000e+00> : vector<8x24xf32>
    %2 = tpu.matmul %0, %1, %cst {dimension_numbers = #tpu.dot_dimension_numbers<[1], [0], [0], [1], [0, 0, 1, 1], [], []>} : vector<8x8xf32>, vector<8x24xf32>, vector<8x24xf32> -> vector<8x24xf32>
    %c0_3 = arith.constant 0 : index
    %c0_4 = arith.constant 0 : index
    %3 = vector.load %arg3[%c0_3, %c0_4] : memref<1x24xf32, #tpu.memory_space<vmem>>, vector<1x24xf32>
    %4 = vector.broadcast %3 : vector<1x24xf32> to vector<8x24xf32>
    %5 = arith.addf %2, %4 : vector<8x24xf32>
    %cst_5 = arith.constant 0.000000e+00 : f32
    %6 = vector.broadcast %cst_5 : f32 to vector<8x24xf32>
    %7 = arith.maximumf %5, %6 : vector<8x24xf32>
    %c0_6 = arith.constant 0 : index
    %c0_7 = arith.constant 0 : index
    %8 = vector.load %arg4[%c0_6, %c0_7] : memref<24x24xf32, #tpu.memory_space<vmem>>, vector<24x24xf32>
    %cst_8 = arith.constant dense<0.000000e+00> : vector<8x24xf32>
    %9 = tpu.matmul %7, %8, %cst_8 {dimension_numbers = #tpu.dot_dimension_numbers<[1], [0], [0], [1], [0, 0, 1, 1], [], []>} : vector<8x24xf32>, vector<24x24xf32>, vector<8x24xf32> -> vector<8x24xf32>
    %c0_9 = arith.constant 0 : index
    %c0_10 = arith.constant 0 : index
    %10 = vector.load %arg5[%c0_9, %c0_10] : memref<1x24xf32, #tpu.memory_space<vmem>>, vector<1x24xf32>
    %11 = vector.broadcast %10 : vector<1x24xf32> to vector<8x24xf32>
    %12 = arith.addf %9, %11 : vector<8x24xf32>
    %cst_11 = arith.constant 0.000000e+00 : f32
    %13 = vector.broadcast %cst_11 : f32 to vector<8x24xf32>
    %14 = arith.maximumf %12, %13 : vector<8x24xf32>
    %c0_12 = arith.constant 0 : index
    %c0_13 = arith.constant 0 : index
    %15 = vector.load %arg6[%c0_12, %c0_13] : memref<24x128xf32, #tpu.memory_space<vmem>>, vector<24x128xf32>
    %cst_14 = arith.constant dense<0.000000e+00> : vector<8x128xf32>
    %16 = tpu.matmul %14, %15, %cst_14 {dimension_numbers = #tpu.dot_dimension_numbers<[1], [0], [0], [1], [0, 0, 1, 1], [], []>} : vector<8x24xf32>, vector<24x128xf32>, vector<8x128xf32> -> vector<8x128xf32>
    %c0_15 = arith.constant 0 : index
    %c0_16 = arith.constant 0 : index
    %17 = vector.load %arg7[%c0_15, %c0_16] : memref<1x128xf32, #tpu.memory_space<vmem>>, vector<1x128xf32>
    %18 = vector.broadcast %17 : vector<1x128xf32> to vector<8x128xf32>
    %19 = arith.addf %16, %18 : vector<8x128xf32>
    %c0_17 = arith.constant 0 : index
    %c0_18 = arith.constant 0 : index
    %20 = vector.load %arg8[%c0_17, %c0_18] : memref<8x128xf32, #tpu.memory_space<vmem>>, vector<8x128xf32>
    tpu.vector_store %arg8[%c0_17, %c0_18], %19 {strides = array<i32>} : memref<8x128xf32, #tpu.memory_space<vmem>>, vector<8x128xf32>,
    return
  }
  func.func @transform_0(%arg0: i32) -> (i32, i32) {
    %c0_i32 = arith.constant 0 : i32
    %c0_i32_0 = arith.constant 0 : i32
    return %arg0, %c0_i32 : i32, i32
  }
  func.func @transform_1(%arg0: i32) -> (i32, i32) {
    %c0_i32 = arith.constant 0 : i32
    %c0_i32_0 = arith.constant 0 : i32
    %c0_i32_1 = arith.constant 0 : i32
    return %c0_i32, %c0_i32_0 : i32, i32
  }
  func.func @transform_2(%arg0: i32) -> (i32, i32) {
    %c0_i32 = arith.constant 0 : i32
    %c0_i32_0 = arith.constant 0 : i32
    %c0_i32_1 = arith.constant 0 : i32
    return %c0_i32, %c0_i32_0 : i32, i32
  }
  func.func @transform_3(%arg0: i32) -> (i32, i32) {
    %c0_i32 = arith.constant 0 : i32
    %c0_i32_0 = arith.constant 0 : i32
    %c0_i32_1 = arith.constant 0 : i32
    return %c0_i32, %c0_i32_0 : i32, i32
  }
  func.func @transform_4(%arg0: i32) -> (i32, i32) {
    %c0_i32 = arith.constant 0 : i32
    %c0_i32_0 = arith.constant 0 : i32
    %c0_i32_1 = arith.constant 0 : i32
    return %c0_i32, %c0_i32_0 : i32, i32
  }
  func.func @transform_5(%arg0: i32) -> (i32, i32) {
    %c0_i32 = arith.constant 0 : i32
    %c0_i32_0 = arith.constant 0 : i32
    %c0_i32_1 = arith.constant 0 : i32
    return %c0_i32, %c0_i32_0 : i32, i32
  }
  func.func @transform_6(%arg0: i32) -> (i32, i32) {
    %c0_i32 = arith.constant 0 : i32
    %c0_i32_0 = arith.constant 0 : i32
    %c0_i32_1 = arith.constant 0 : i32
    return %c0_i32, %c0_i32_0 : i32, i32
  }
  func.func @transform_7(%arg0: i32) -> (i32, i32) {
    %c0_i32 = arith.constant 0 : i32
    %c0_i32_0 = arith.constant 0 : i32
    return %arg0, %c0_i32 : i32, i32
  }
}

</mosaic_0001>

<bundles_post_ra>
// kernel: tpu_custom_call.1
= control target key start
LH: loop header
LB: loop body
LE: loop exit
PB: predicated region body
PF: predicated region fallthrough
CT: control target
= control target key end

     0   :  { %12 = vsyncpa [#allocation3], 0  ;;  %s640_s0 = inlined_call_operand.hbm [shape: f32[8,8], index: 0, kind: input, shape index: {}]   ;;  %s641_s1 = inlined_call_operand.hbm [shape: f32[8,24], index: 1, kind: input, shape index: {}]   ;;  %s642_s2 = inlined_call_operand.vmem [shape: f32[1,24], index: 2, kind: input, shape index: {}]   ;;  %s643_s3 = inlined_call_operand.hbm [shape: f32[24,24], index: 3, kind: input, shape index: {}]   ;;  %s644_s4 = inlined_call_operand.vmem [shape: f32[1,24], index: 4, kind: input, shape index: {}]   ;;  %s645_s5 = inlined_call_operand.hbm [shape: f32[24,128], index: 5, kind: input, shape index: {}]   ;;  %s646_s6 = inlined_call_operand.vmem [shape: f32[1,128], index: 6, kind: input, shape index: {}]   ;;  %s647_s7 = inlined_call_operand.hbm [shape: f32[8,128], index: 7, kind: output, shape index: {}]  }
   0x1   :  { %13 = vsyncpa [#allocation6], 0 }
   0x2   :  { %14 = vsyncpa [#allocation9], 0 }
   0x3   :  { %15 = vsyncpa [#allocation4], 0  ;;  %s521_s24 = smov [#allocation5]   ;;  %s522_s26 = smov [#allocation2]  }
   0x4   :  { %s32_s25 = sshll.u32 %s521_s24, 4  ;;  %s22_s27 = sshll.u32 %s522_s26, 4  ;;  %s33_s25 = int_to_ptr.vmem [resolvable:$true] %s32_s25  ;;  %s23_s27 = int_to_ptr.vmem [resolvable:$true] %s22_s27 }
   0x5   :  { %s403_s30 = scalar_lea.hbm %s641_s1, 128 }
   0x6   :  { %p404_p0 = scmp.ne.s32.totalorder %s641_s1, %s403_s30  ;;  %p407_p1 = scmp.lt.u32.totalorder %s403_s30, %s641_s1 }
   0x8   :  { %p409_p2 = pnand %p407_p1, %p404_p0 }
   0xa   :  { %412 = shalt.err (!%p409_p2)
}
   0xb   :  { %s413_s12 = scalar_lea.vmem %s33_s25, 128  ;;  %p418_p4 = scmp.lt.s32.totalorder %s33_s25, %s33_s25 }
   0xc   :  { %p414_p3 = scmp.ne.s32.totalorder %s33_s25, %s413_s12  ;;  %p419_p5 = scmp.lt.s32.totalorder %s413_s12, %s413_s12 }
   0xe   :  { %p420_p6 = por %p419_p5, %p418_p4 }
  0x10   :  { %p421_p7 = pnand %p420_p6, %p414_p3 }
  0x12   :  { %424 = shalt.err (!%p421_p7)
}
  0x13   :  { %35 = dma.hbm_to_vmem [thread:$0]  %s641_s1, 128, %s33_s25, [#allocation6]  }
  0x14   :  { %s425_s17 = scalar_lea.hbm %s640_s0, 128 }
  0x15   :  { %p426_p8 = scmp.ne.s32.totalorder %s640_s0, %s425_s17  ;;  %p429_p9 = scmp.lt.u32.totalorder %s425_s17, %s640_s0 }
  0x17   :  { %p431_p10 = pnand %p429_p9, %p426_p8 }
  0x19   :  { %434 = shalt.err (!%p431_p10)
}
  0x1a   :  { %s435_s22 = scalar_lea.vmem %s23_s27, 128  ;;  %p440_p12 = scmp.lt.s32.totalorder %s23_s27, %s23_s27 }
  0x1b   :  { %p436_p11 = scmp.ne.s32.totalorder %s23_s27, %s435_s22  ;;  %p441_p13 = scmp.lt.s32.totalorder %s435_s22, %s435_s22 }
  0x1d   :  { %p442_p0 = por %p441_p13, %p440_p12 }
  0x1f   :  { %p443_p1 = pnand %p442_p0, %p436_p11 }
  0x21   :  { %446 = shalt.err (!%p443_p1)
}
  0x22   :  { %25 = dma.hbm_to_vmem [thread:$0]  %s640_s0, 128, %s23_s27, [#allocation3]  }
  0x23   :  { %s523_s24 = smov [#allocation7]   ;;  %s447_s29 = scalar_lea.hbm %s643_s3, 384 }
  0x24   :  { %s43_s25 = sshll.u32 %s523_s24, 4  ;;  %p448_p2 = scmp.ne.s32.totalorder %s643_s3, %s447_s29  ;;  %s44_s25 = int_to_ptr.vmem [resolvable:$true] %s43_s25 }
  0x25   :  { %p451_p3 = scmp.lt.u32.totalorder %s447_s29, %s643_s3 }
  0x27   :  { %p453_p4 = pnand %p451_p3, %p448_p2 }
  0x29   :  { %456 = shalt.err (!%p453_p4)
}
  0x2a   :  { %s457_s11 = scalar_lea.vmem %s44_s25, 384  ;;  %p462_p6 = scmp.lt.s32.totalorder %s44_s25, %s44_s25 }
  0x2b   :  { %p458_p5 = scmp.ne.s32.totalorder %s44_s25, %s457_s11  ;;  %p463_p7 = scmp.lt.s32.totalorder %s457_s11, %s457_s11 }
  0x2d   :  { %p464_p8 = por %p463_p7, %p462_p6 }
  0x2f   :  { %p465_p9 = pnand %p464_p8, %p458_p5 }
  0x31   :  { %468 = shalt.err (!%p465_p9)
}
  0x32   :  { %s524_s0 = smov 128   ;;  %s525_s27 = smov 8  }
  0x33   :  { %49 = dma.hbm_to_vmem [thread:$0]  %s643_s3, 384, %s44_s25, [#allocation6], %s524_s0, %s524_s0, %s525_s27  }
  0x34   :  { %s526_s14 = smov [#allocation8]   ;;  %s469_s18 = scalar_lea.hbm %s645_s5, 384 }
  0x35   :  { %s57_s15 = sshll.u32 %s526_s14, 4  ;;  %p470_p10 = scmp.ne.s32.totalorder %s645_s5, %s469_s18  ;;  %s58_s15 = int_to_ptr.vmem [resolvable:$true] %s57_s15 }
  0x36   :  { %p473_p11 = scmp.lt.u32.totalorder %s469_s18, %s645_s5 }
  0x38   :  { %p475_p12 = pnand %p473_p11, %p470_p10 }
  0x3a   :  { %478 = shalt.err (!%p475_p12)
}
  0x3b   :  { %s479_s1 = scalar_lea.vmem %s58_s15, 384  ;;  %p484_p0 = scmp.lt.s32.totalorder %s58_s15, %s58_s15 }
  0x3c   :  { %p480_p13 = scmp.ne.s32.totalorder %s58_s15, %s479_s1  ;;  %p485_p1 = scmp.lt.s32.totalorder %s479_s1, %s479_s1 }
  0x3e   :  { %p486_p2 = por %p485_p1, %p484_p0 }
  0x40   :  { %p487_p3 = pnand %p486_p2, %p480_p13 }
  0x42   :  { %490 = shalt.err (!%p487_p3)
}
  0x43   :  { %63 = dma.hbm_to_vmem [thread:$0]  %s645_s5, 384, %s58_s15, [#allocation9], %s524_s0, %s524_s0, %s525_s27  }
  0x44   :  { %513 = dma.done.wait [#allocation3], 128  }
  0x45   :  { %514 = vsyncadd [#allocation3], 4294967168 }
  0x46   :  { %515 = dma.done.wait [#allocation6], 512  }
  0x47   :  { %516 = vsyncadd [#allocation6], 4294966784 }
  0x48   :  { %517 = dma.done.wait [#allocation9], 384  }
  0x49   :  { %518 = vsyncadd [#allocation9], 4294966912  ;;  %v527_v0 = vmov 0.0   ;;  %vm528_vm0 = vmmov 0   ;;  %v529_v1 = vmov 0.0|0.0   ;;  %vm87_vm1 = vcmask 64512  }
  0x4a   :  { %364 = vmatprep.subr.mxu0 %v527_v0  ;;  %366 = vmatprep.mubr.msk.f32.mxu0 %vm528_vm0, %v527_v0  ;;  %v79_v2 = vld [vmem:[#allocation5] sm:$0xff]  ;;  %v78_v3 = vld [vmem:[#allocation2] sm:$0xff]  ;;  %v162_v4 = vld [vmem:[#allocation7] sm:$0xff]  ;;  %vm172_vm2 = vcmask 195584  }
  0x4b   :  { %387 = vmatprep.subr.bf16.mxu1 %v529_v1  ;;  %375 = vmatprep.mubr.msk.f32.mxu1 %vm528_vm0, %v527_v0  ;;  %v163_v5 = vld [vmem:[#allocation7 + $0x8] sm:$0xff]  ;;  %v164_v7 = vld [vmem:[#allocation7 + $0x10] sm:$0xff]  ;;  %v247_v8 = vld [vmem:[#allocation8] sm:$0xff] }
  0x4c   :  { %365 = vmatpush3.msra.mxu0 %v79_v2  ;;  %v388_v6 = vpack.c.bf16 %v163_v5, %v162_v4  ;;  %v248_v9 = vld [vmem:[#allocation8 + $0x8] sm:$0xff]  ;;  %v348_v11 = vld [vmem:[%s642_s2] ss:$0 sm:$0xff]  ;;  %v249_v16 = vld [vmem:[#allocation8 + $0x10] sm:$0xff]  ;;  %s530_s2 = smov [#allocation10]  }
  0x4d   :  { %367 = vmatmul.mubr.msk.f32.vlgmr.msra.gmra.mrb[0].mxu0 %vm87_vm1, %v78_v3  ;;  %390 = vmatprep.subr.bf16.mxu0 %v529_v1  ;;  %v391_v10 = vpack.c.bf16 %v248_v9, %v247_v8  ;;  %v350_v17 = vld [vmem:[%s644_s4] ss:$0 sm:$0xff]  ;;  %s337_s30 = sshll.u32 %s530_s2, 4  ;;  %s338_s30 = int_to_ptr.vmem [resolvable:$true] %s337_s30 }
  0x4e   :  { %384 = vmatprep.mubr.msk.f32.mxu0 %vm528_vm0, %v527_v0  ;;  %389 = vmatpush3.bf16.msra.mxu1 %v388_v6  ;;  %v352_v22 = vld [vmem:[%s646_s6] ss:$0 sm:$0xff]  ;;  %s491_s8 = scalar_lea.vmem %s338_s30, 128  ;;  %p496_p5 = scmp.lt.s32.totalorder %s338_s30, %s338_s30 }
  0x4f   :  { %373 = vmatprep.subr.mxu1 %v527_v0  ;;  %392 = vmatpush3.bf16.msra.mxu0 %v391_v10  ;;  %p492_p4 = scmp.ne.s32.totalorder %s338_s30, %s491_s8  ;;  %p497_p6 = scmp.lt.s32.totalorder %s491_s8, %s491_s8 }
  0x50   :  { %382 = vmatprep.subr.mxu0 %v527_v0 }
  0x51   :  { %p498_p7 = por %p497_p6, %p496_p5 }
  0x52   :  { %374 = vmatpush3.msra.mxu1 %v164_v7 }
  0x53   :  { %383 = vmatpush3.msra.mxu0 %v249_v16  ;;  %p499_p8 = pnand %p498_p7, %p492_p4 }
 0x120   :  { %v157_v12 = vpop.f32.mrb[0].mxu0 }
 0x121   :  { %v158_v13 = vadd.f32 %v348_v11, %v157_v12  ;;  %v368_v14 = vpop.f32.mrb[1].mxu0 }
 0x123   :  { %v161_v15 = vmax.f32 %v158_v13, 0.0 }
 0x125   :  { %376 = vmatmul.mubr.msk.f32.vlgmr.msra.gmra.mrb[0].mxu1 %vm172_vm2, %v161_v15 }
 0x1f8   :  { %v242_v18 = vpop.f32.mrb[0].mxu1 }
 0x1f9   :  { %v243_v19 = vadd.f32 %v350_v17, %v242_v18  ;;  %v377_v20 = vpop.f32.mrb[1].mxu1 }
 0x1fb   :  { %v246_v21 = vmax.f32 %v243_v19, 0.0 }
 0x1fd   :  { %385 = vmatmul.mubr.msk.f32.vlgmr.msra.gmra.mrb[2].mxu0 %vm172_vm2, %v246_v21 }
 0x2d0   :  { %v326_v23 = vpop.f32.mrb[2].mxu0 }
 0x2d1   :  { %v327_v24 = vadd.f32 %v352_v22, %v326_v23  ;;  %v386_v25 = vpop.f32.mrb[3].mxu0 }
 0x2d3   :  { %330 = vst [vmem:[#allocation10] sm:$0xff] %v327_v24 }
 0x2d4   :  { %502 = shalt.err (!%p499_p8)
}
 0x2d5   :  { %s503_s10 = scalar_lea.hbm %s647_s7, 128 }
 0x2d6   :  { %p504_p9 = scmp.ne.s32.totalorder %s647_s7, %s503_s10  ;;  %p507_p10 = scmp.lt.u32.totalorder %s503_s10, %s647_s7 }
 0x2d8   :  { %p509_p11 = pnand %p507_p10, %p504_p9 }
 0x2da   :  { %512 = shalt.err (!%p509_p11)
}
 0x2db   :  { %340 = dma.vmem_to_hbm [thread:$0]  %s338_s30, 128, %s647_s7, [#allocation4]  }
 0x2dc   :  { %519 = dma.done.wait [#allocation4], 128  }
 0x2dd   :  { %520 = vsyncadd [#allocation4], 4294967168 }
 0x2de   :  { %344 = vsyncpa [#allocation3], 1 }
 0x2df   :  { %345 = vsyncpa [#allocation6], 1 }
 0x2e0   :  { %346 = vsyncpa [#allocation9], 1 }
 0x2e1   :  { %347 = vsyncpa [#allocation4], 1 }

</bundles_post_ra>
